<compile_context>
chip_gen: v6e
topology: v6e:2x2x1
jax: 0.10.0
libtpu: 0.0.40
codegen_flags: <defaults>
</compile_context>

<pallas_src>
import jax
import jax.numpy as jnp
from jax.experimental import pallas as pl
from jax.experimental.pallas import tpu as pltpu


def _conv_block_kernel(xr_ref, a_ref, b1_ref, bmat_ref, b2_ref, o_ref):
    """One batch element per grid step.

    xr_ref  : (1, H+2, W*Cin)    bf16  row-flattened NHWC input, zero-padded in H
    a_ref   : (3, W*Cin, W*Cout) bf16  band (Toeplitz) weights for conv1, one per dy
    b1_ref  : (1, W*Cout)        f32   conv1 bias tiled across w
    bmat_ref: (3, W*Cout, W*Cout) bf16 band weights for conv2, one per dy
    b2_ref  : (1, W*Cout)        f32   conv2 bias tiled across w
    o_ref   : (1, H, W*Cout)     f32   lane-dense output
    """
    H = o_ref.shape[1]
    WC = o_ref.shape[2]  # W * Cout (== 128 here -> fully lane-dense)

    # ---- conv1 + ReLU: 3 fat matmuls (one per vertical tap), bf16 in, f32 acc.
    acc1 = jnp.zeros((H, WC), jnp.float32)
    for dy in range(3):
        xrow = xr_ref[0, dy:dy + H, :]                      # (H, W*Cin) bf16
        acc1 = acc1 + jnp.dot(xrow, a_ref[dy],
                              preferred_element_type=jnp.float32)
    y1 = jnp.maximum(acc1 + b1_ref[...], 0.0)               # (H, W*Cout) f32
    y1_bf = y1.astype(jnp.bfloat16)                         # cast once, reuse

    # ---- conv2 + ReLU: vertical taps via XLU roll + narrow row masks (H-pad).
    row = jax.lax.broadcasted_iota(jnp.int32, (H, 1), 0)
    # y1_dn[h] = y1[h-1] (zero at h==0); y1_up[h] = y1[h+1] (zero at h==H-1).
    y1_dn = jnp.where(row == 0, 0.0, pltpu.roll(y1, shift=1, axis=0))
    y1_up = jnp.where(row == H - 1, 0.0, pltpu.roll(y1, shift=H - 1, axis=0))

    acc2 = jnp.dot(y1_dn.astype(jnp.bfloat16), bmat_ref[0],
                   preferred_element_type=jnp.float32)
    acc2 = acc2 + jnp.dot(y1_bf, bmat_ref[1],
                          preferred_element_type=jnp.float32)
    acc2 = acc2 + jnp.dot(y1_up.astype(jnp.bfloat16), bmat_ref[2],
                          preferred_element_type=jnp.float32)
    y2 = jnp.maximum(acc2 + b2_ref[...], 0.0)               # (H, W*Cout) f32

    o_ref[0] = y2.astype(o_ref.dtype)                       # full unmasked vst


def _band_weights(w_oihw, W):
    """Fold the 3 horizontal taps + horizontal zero-padding of a 3x3 conv into
    block-Toeplitz matrices.

    Returns A with A[dy, s*Cin + c, w*Cout + o] = w_oihw[o, c, dy, dx] for
    s == w + dx - 1 within [0, W), zero elsewhere.  Shape (3, W*Cin, W*Cout).
    """
    cout, cin = w_oihw.shape[0], w_oihw.shape[1]
    s = jnp.arange(W)[:, None]
    w = jnp.arange(W)[None, :]
    place = jnp.stack([(s == w + dx - 1) for dx in range(3)], axis=0)
    place = place.astype(w_oihw.dtype)                      # (3, W, W)
    band = jnp.einsum('dsw,ocyd->yscwo', place, w_oihw)     # (3, W, cin, W, cout)
    return band.reshape(3, W * cin, W * cout)


@jax.jit
def conv_block(x_nchw, w1_oihw, b1, w2_oihw, b2):
    """Pallas ConvBlock forward. x_nchw: (N, Cin, H, W) float32 -> (N, Cout, H, W)."""
    N, Cin, H, W = x_nchw.shape
    Cout = w1_oihw.shape[0]

    # Glue (plain XLA): NCHW -> row-flattened NHWC (N, H, W*Cin), pad H by 1,
    # cast the MXU feed to bf16 (halves HBM traffic for x and weights).
    x_rows = jnp.transpose(x_nchw, (0, 2, 3, 1)).reshape(N, H, W * Cin)
    x_rows = jnp.pad(x_rows, ((0, 0), (1, 1), (0, 0))).astype(jnp.bfloat16)

    A = _band_weights(w1_oihw, W).astype(jnp.bfloat16)      # (3, W*Cin,  W*Cout)
    B = _band_weights(w2_oihw, W).astype(jnp.bfloat16)      # (3, W*Cout, W*Cout)
    b1r = jnp.tile(b1, W).reshape(1, W * Cout).astype(jnp.float32)
    b2r = jnp.tile(b2, W).reshape(1, W * Cout).astype(jnp.float32)

    out_rows = pl.pallas_call(
        _conv_block_kernel,
        out_shape=jax.ShapeDtypeStruct((N, H, W * Cout), jnp.float32),
        grid_spec=pltpu.PrefetchScalarGridSpec(
            num_scalar_prefetch=0,
            grid=(N,),
            in_specs=[
                pl.BlockSpec((1, H + 2, W * Cin), lambda n: (n, 0, 0)),
                pl.BlockSpec((3, W * Cin, W * Cout), lambda n: (0, 0, 0)),
                pl.BlockSpec((1, W * Cout), lambda n: (0, 0)),
                pl.BlockSpec((3, W * Cout, W * Cout), lambda n: (0, 0, 0)),
                pl.BlockSpec((1, W * Cout), lambda n: (0, 0)),
            ],
            out_specs=pl.BlockSpec((1, H, W * Cout), lambda n: (n, 0, 0)),
        ),
        compiler_params=pltpu.CompilerParams(
            dimension_semantics=("parallel",)),
    )(x_rows, A, b1r, B, b2r)

    # Lane-dense (N, H, W*Cout) -> NCHW.
    return jnp.transpose(out_rows.reshape(N, H, W, Cout), (0, 3, 1, 2))


def _reference(x_nchw, w1, b1, w2, b2):
    """Pure-JAX f32 reference (matches PyTorch Conv2d semantics, NCHW / OIHW)."""
    y = jax.lax.conv_general_dilated(
        x_nchw, w1, window_strides=(1, 1), padding="SAME",
        dimension_numbers=("NCHW", "OIHW", "NCHW"))
    y = jnp.maximum(y + b1[None, :, None, None], 0.0)
    y = jax.lax.conv_general_dilated(
        y, w2, window_strides=(1, 1), padding="SAME",
        dimension_numbers=("NCHW", "OIHW", "NCHW"))
    y = jnp.maximum(y + b2[None, :, None, None], 0.0)
    return y


if __name__ == "__main__":
    # Small shapes consistent with the module's forward: x (N, Cin, H, W).
    N, Cin, Cout, H, W = 2, 4, 8, 16, 16   # W * Cout = 128 -> one full lane width

    key = jax.random.PRNGKey(0)
    kx, kw1, kb1, kw2, kb2 = jax.random.split(key, 5)

    x = jax.random.normal(kx, (N, Cin, H, W), jnp.float32)

    # Deterministic synthetic parameters (PyTorch Conv2d shapes: OIHW weights).
    fan1 = Cin * 3 * 3
    fan2 = Cout * 3 * 3
    w1 = jax.random.uniform(kw1, (Cout, Cin, 3, 3), jnp.float32,
                            -1.0 / jnp.sqrt(fan1), 1.0 / jnp.sqrt(fan1))
    b1 = jax.random.uniform(kb1, (Cout,), jnp.float32,
                            -1.0 / jnp.sqrt(fan1), 1.0 / jnp.sqrt(fan1))
    w2 = jax.random.uniform(kw2, (Cout, Cout, 3, 3), jnp.float32,
                            -1.0 / jnp.sqrt(fan2), 1.0 / jnp.sqrt(fan2))
    b2 = jax.random.uniform(kb2, (Cout,), jnp.float32,
                            -1.0 / jnp.sqrt(fan2), 1.0 / jnp.sqrt(fan2))

    out = conv_block(x, w1, b1, w2, b2)
    out = jax.block_until_ready(out)

    ref = _reference(x, w1, b1, w2, b2)
    assert out.shape == (N, Cout, H, W)
    # bf16 MXU feed with f32 accumulation -> tolerance loosened vs pure-f32.
    err = jnp.max(jnp.abs(out - ref))
    assert err < 6e-2, f"mismatch vs. reference conv: max abs err {err}"

    print("KERNEL_OK")
</pallas_src>

<mosaic_0001>
module attributes {stable_mosaic.version = 11 : i64} {
  func.func @_conv_block_kernel(%arg0: i32, %arg1: memref<1x18x64xbf16, #tpu.memory_space<vmem>>, %arg2: memref<3x64x128xbf16, #tpu.memory_space<vmem>>, %arg3: memref<1x128xf32, #tpu.memory_space<vmem>>, %arg4: memref<3x128x128xbf16, #tpu.memory_space<vmem>>, %arg5: memref<1x128xf32, #tpu.memory_space<vmem>>, %arg6: memref<1x16x128xf32, #tpu.memory_space<vmem>>) attributes {dimension_semantics = [#tpu.dimension_semantics<parallel>], iteration_bounds = array<i64: 2>, scalar_prefetch = 0 : i64, scratch_operands = 0 : i64, tpu.core_type = #tpu.core_type<tc>, window_params = [{transform_indices = @transform_0, window_bounds = array<i64: 1, 18, 64>}, {pipeline_mode = #tpu.pipeline_mode<synchronous>, transform_indices = @transform_1, window_bounds = array<i64: 3, 64, 128>}, {pipeline_mode = #tpu.pipeline_mode<synchronous>, transform_indices = @transform_2, window_bounds = array<i64: 1, 128>}, {pipeline_mode = #tpu.pipeline_mode<synchronous>, transform_indices = @transform_3, window_bounds = array<i64: 3, 128, 128>}, {pipeline_mode = #tpu.pipeline_mode<synchronous>, transform_indices = @transform_4, window_bounds = array<i64: 1, 128>}, {transform_indices = @transform_5, window_bounds = array<i64: 1, 16, 128>}]} {
    %cst = arith.constant 0.000000e+00 : f32
    %0 = vector.broadcast %cst : f32 to vector<16x128xf32>
    %c0 = arith.constant 0 : index
    %c0_0 = arith.constant 0 : index
    %c0_1 = arith.constant 0 : index
    %1 = vector.load %arg1[%c0, %c0_0, %c0_1] : memref<1x18x64xbf16, #tpu.memory_space<vmem>>, vector<1x16x64xbf16>
    %2 = vector.shape_cast %1 : vector<1x16x64xbf16> to vector<16x64xbf16>
    %c0_2 = arith.constant 0 : index
    %c0_3 = arith.constant 0 : index
    %c0_4 = arith.constant 0 : index
    %3 = vector.load %arg2[%c0_2, %c0_3, %c0_4] : memref<3x64x128xbf16, #tpu.memory_space<vmem>>, vector<1x64x128xbf16>
    %4 = vector.shape_cast %3 : vector<1x64x128xbf16> to vector<64x128xbf16>
    %cst_5 = arith.constant dense<0.000000e+00> : vector<16x128xf32>
    %5 = tpu.matmul %2, %4, %cst_5 {dimension_numbers = #tpu.dot_dimension_numbers<[1], [0], [0], [1], [0, 0, 1, 1], [], []>} : vector<16x64xbf16>, vector<64x128xbf16>, vector<16x128xf32> -> vector<16x128xf32>
    %6 = arith.addf %0, %5 : vector<16x128xf32>
    %c0_6 = arith.constant 0 : index
    %c1 = arith.constant 1 : index
    %c0_7 = arith.constant 0 : index
    %7 = vector.load %arg1[%c0_6, %c1, %c0_7] : memref<1x18x64xbf16, #tpu.memory_space<vmem>>, vector<1x16x64xbf16>
    %8 = vector.shape_cast %7 : vector<1x16x64xbf16> to vector<16x64xbf16>
    %c1_8 = arith.constant 1 : index
    %c0_9 = arith.constant 0 : index
    %c0_10 = arith.constant 0 : index
    %9 = vector.load %arg2[%c1_8, %c0_9, %c0_10] : memref<3x64x128xbf16, #tpu.memory_space<vmem>>, vector<1x64x128xbf16>
    %10 = vector.shape_cast %9 : vector<1x64x128xbf16> to vector<64x128xbf16>
    %cst_11 = arith.constant dense<0.000000e+00> : vector<16x128xf32>
    %11 = tpu.matmul %8, %10, %cst_11 {dimension_numbers = #tpu.dot_dimension_numbers<[1], [0], [0], [1], [0, 0, 1, 1], [], []>} : vector<16x64xbf16>, vector<64x128xbf16>, vector<16x128xf32> -> vector<16x128xf32>
    %12 = arith.addf %6, %11 : vector<16x128xf32>
    %c0_12 = arith.constant 0 : index
    %c2 = arith.constant 2 : index
    %c0_13 = arith.constant 0 : index
    %13 = vector.load %arg1[%c0_12, %c2, %c0_13] : memref<1x18x64xbf16, #tpu.memory_space<vmem>>, vector<1x16x64xbf16>
    %14 = vector.shape_cast %13 : vector<1x16x64xbf16> to vector<16x64xbf16>
    %c2_14 = arith.constant 2 : index
    %c0_15 = arith.constant 0 : index
    %c0_16 = arith.constant 0 : index
    %15 = vector.load %arg2[%c2_14, %c0_15, %c0_16] : memref<3x64x128xbf16, #tpu.memory_space<vmem>>, vector<1x64x128xbf16>
    %16 = vector.shape_cast %15 : vector<1x64x128xbf16> to vector<64x128xbf16>
    %cst_17 = arith.constant dense<0.000000e+00> : vector<16x128xf32>
    %17 = tpu.matmul %14, %16, %cst_17 {dimension_numbers = #tpu.dot_dimension_numbers<[1], [0], [0], [1], [0, 0, 1, 1], [], []>} : vector<16x64xbf16>, vector<64x128xbf16>, vector<16x128xf32> -> vector<16x128xf32>
    %18 = arith.addf %12, %17 : vector<16x128xf32>
    %c0_18 = arith.constant 0 : index
    %c0_19 = arith.constant 0 : index
    %19 = vector.load %arg3[%c0_18, %c0_19] : memref<1x128xf32, #tpu.memory_space<vmem>>, vector<1x128xf32>
    %20 = vector.broadcast %19 : vector<1x128xf32> to vector<16x128xf32>
    %21 = arith.addf %18, %20 : vector<16x128xf32>
    %cst_20 = arith.constant 0.000000e+00 : f32
    %22 = vector.broadcast %cst_20 : f32 to vector<16x128xf32>
    %23 = arith.maximumf %21, %22 : vector<16x128xf32>
    %24 = arith.truncf %23 : vector<16x128xf32> to vector<16x128xbf16>
    %25 = tpu.iota {dimensions = array<i32: 0>} : vector<16x1xi32>
    %c0_i32 = arith.constant 0 : i32
    %26 = vector.broadcast %c0_i32 : i32 to vector<16x1xi32>
    %27 = arith.cmpi eq, %25, %26 : vector<16x1xi32>
    %c1_i32 = arith.constant 1 : i32
    %28 = tpu.dynamic_rotate %23 by %c1_i32 dim 0 : vector<16x128xf32>, i32 -> vector<16x128xf32>
    %cst_21 = arith.constant 0.000000e+00 : f32
    %29 = vector.shape_cast %27 : vector<16x1xi1> to vector<16x1xi1>
    %30 = vector.broadcast %29 : vector<16x1xi1> to vector<16x128xi1>
    %31 = vector.broadcast %cst_21 : f32 to vector<16x128xf32>
    %32 = arith.select %30, %31, %28 : vector<16x128xi1>, vector<16x128xf32>
    %c15_i32 = arith.constant 15 : i32
    %33 = vector.broadcast %c15_i32 : i32 to vector<16x1xi32>
    %34 = arith.cmpi eq, %25, %33 : vector<16x1xi32>
    %c15_i32_22 = arith.constant 15 : i32
    %35 = tpu.dynamic_rotate %23 by %c15_i32_22 dim 0 : vector<16x128xf32>, i32 -> vector<16x128xf32>
    %cst_23 = arith.constant 0.000000e+00 : f32
    %36 = vector.shape_cast %34 : vector<16x1xi1> to vector<16x1xi1>
    %37 = vector.broadcast %36 : vector<16x1xi1> to vector<16x128xi1>
    %38 = vector.broadcast %cst_23 : f32 to vector<16x128xf32>
    %39 = arith.select %37, %38, %35 : vector<16x128xi1>, vector<16x128xf32>
    %40 = arith.truncf %32 : vector<16x128xf32> to vector<16x128xbf16>
    %c0_24 = arith.constant 0 : index
    %c0_25 = arith.constant 0 : index
    %c0_26 = arith.constant 0 : index
    %41 = vector.load %arg4[%c0_24, %c0_25, %c0_26] : memref<3x128x128xbf16, #tpu.memory_space<vmem>>, vector<1x128x128xbf16>
    %42 = vector.shape_cast %41 : vector<1x128x128xbf16> to vector<128x128xbf16>
    %cst_27 = arith.constant dense<0.000000e+00> : vector<16x128xf32>
    %43 = tpu.matmul %40, %42, %cst_27 {dimension_numbers = #tpu.dot_dimension_numbers<[1], [0], [0], [1], [0, 0, 1, 1], [], []>} : vector<16x128xbf16>, vector<128x128xbf16>, vector<16x128xf32> -> vector<16x128xf32>
    %c1_28 = arith.constant 1 : index
    %c0_29 = arith.constant 0 : index
    %c0_30 = arith.constant 0 : index
    %44 = vector.load %arg4[%c1_28, %c0_29, %c0_30] : memref<3x128x128xbf16, #tpu.memory_space<vmem>>, vector<1x128x128xbf16>
    %45 = vector.shape_cast %44 : vector<1x128x128xbf16> to vector<128x128xbf16>
    %cst_31 = arith.constant dense<0.000000e+00> : vector<16x128xf32>
    %46 = tpu.matmul %24, %45, %cst_31 {dimension_numbers = #tpu.dot_dimension_numbers<[1], [0], [0], [1], [0, 0, 1, 1], [], []>} : vector<16x128xbf16>, vector<128x128xbf16>, vector<16x128xf32> -> vector<16x128xf32>
    %47 = arith.addf %43, %46 : vector<16x128xf32>
    %48 = arith.truncf %39 : vector<16x128xf32> to vector<16x128xbf16>
    %c2_32 = arith.constant 2 : index
    %c0_33 = arith.constant 0 : index
    %c0_34 = arith.constant 0 : index
    %49 = vector.load %arg4[%c2_32, %c0_33, %c0_34] : memref<3x128x128xbf16, #tpu.memory_space<vmem>>, vector<1x128x128xbf16>
    %50 = vector.shape_cast %49 : vector<1x128x128xbf16> to vector<128x128xbf16>
    %cst_35 = arith.constant dense<0.000000e+00> : vector<16x128xf32>
    %51 = tpu.matmul %48, %50, %cst_35 {dimension_numbers = #tpu.dot_dimension_numbers<[1], [0], [0], [1], [0, 0, 1, 1], [], []>} : vector<16x128xbf16>, vector<128x128xbf16>, vector<16x128xf32> -> vector<16x128xf32>
    %52 = arith.addf %47, %51 : vector<16x128xf32>
    %c0_36 = arith.constant 0 : index
    %c0_37 = arith.constant 0 : index
    %53 = vector.load %arg5[%c0_36, %c0_37] : memref<1x128xf32, #tpu.memory_space<vmem>>, vector<1x128xf32>
    %54 = vector.broadcast %53 : vector<1x128xf32> to vector<16x128xf32>
    %55 = arith.addf %52, %54 : vector<16x128xf32>
    %cst_38 = arith.constant 0.000000e+00 : f32
    %56 = vector.broadcast %cst_38 : f32 to vector<16x128xf32>
    %57 = arith.maximumf %55, %56 : vector<16x128xf32>
    %c0_39 = arith.constant 0 : index
    %c0_40 = arith.constant 0 : index
    %c0_41 = arith.constant 0 : index
    %58 = vector.load %arg6[%c0_39, %c0_40, %c0_41] : memref<1x16x128xf32, #tpu.memory_space<vmem>>, vector<1x16x128xf32>
    %59 = vector.shape_cast %58 : vector<1x16x128xf32> to vector<16x128xf32>
    %60 = vector.shape_cast %57 : vector<16x128xf32> to vector<1x16x128xf32>
    tpu.vector_store %arg6[%c0_39, %c0_40, %c0_41], %60 {strides = array<i32>} : memref<1x16x128xf32, #tpu.memory_space<vmem>>, vector<1x16x128xf32>,
    return
  }
  func.func @transform_0(%arg0: i32) -> (i32, i32, i32) {
    %c0_i32 = arith.constant 0 : i32
    %c0_i32_0 = arith.constant 0 : i32
    %c0_i32_1 = arith.constant 0 : i32
    return %arg0, %c0_i32, %c0_i32_0 : i32, i32, i32
  }
  func.func @transform_1(%arg0: i32) -> (i32, i32, i32) {
    %c0_i32 = arith.constant 0 : i32
    %c0_i32_0 = arith.constant 0 : i32
    %c0_i32_1 = arith.constant 0 : i32
    %c0_i32_2 = arith.constant 0 : i32
    return %c0_i32, %c0_i32_0, %c0_i32_1 : i32, i32, i32
  }
  func.func @transform_2(%arg0: i32) -> (i32, i32) {
    %c0_i32 = arith.constant 0 : i32
    %c0_i32_0 = arith.constant 0 : i32
    %c0_i32_1 = arith.constant 0 : i32
    return %c0_i32, %c0_i32_0 : i32, i32
  }
  func.func @transform_3(%arg0: i32) -> (i32, i32, i32) {
    %c0_i32 = arith.constant 0 : i32
    %c0_i32_0 = arith.constant 0 : i32
    %c0_i32_1 = arith.constant 0 : i32
    %c0_i32_2 = arith.constant 0 : i32
    return %c0_i32, %c0_i32_0, %c0_i32_1 : i32, i32, i32
  }
  func.func @transform_4(%arg0: i32) -> (i32, i32) {
    %c0_i32 = arith.constant 0 : i32
    %c0_i32_0 = arith.constant 0 : i32
    %c0_i32_1 = arith.constant 0 : i32
    return %c0_i32, %c0_i32_0 : i32, i32
  }
  func.func @transform_5(%arg0: i32) -> (i32, i32, i32) {
    %c0_i32 = arith.constant 0 : i32
    %c0_i32_0 = arith.constant 0 : i32
    %c0_i32_1 = arith.constant 0 : i32
    return %arg0, %c0_i32, %c0_i32_0 : i32, i32, i32
  }
}

</mosaic_0001>

<bundles_post_ra>
// kernel: tile.13
= control target key start
LH: loop header
LB: loop body
LE: loop exit
PB: predicated region body
PF: predicated region fallthrough
CT: control target
= control target key end

     0   :  { %s28_s0 = inlined_call_operand.vmem [shape: f32[8], index: 0, kind: input, shape index: {}]   ;;  %s29_s1 = inlined_call_operand.vmem [shape: f32[16,8], index: 1, kind: output, shape index: {}]  }
   0x1   :  { %v4_v0 = vld [vmem:[%s28_s0] ss:$0 sm:$0xff] }
   0x2   :  { %5 = vst [vmem:[%s29_s1] sm:$0xff] %v4_v0  ;;  %8 = vst [vmem:[%s29_s1 + $0x8] sm:$0xff] %v4_v0 }

// kernel: tile.14
= control target key start
LH: loop header
LB: loop body
LE: loop exit
PB: predicated region body
PF: predicated region fallthrough
CT: control target
= control target key end

     0   :  { %s133_s10 = smov 120   ;;  %s134_s11 = smov 104   ;;  %vm3_vm0 = vcmask 64512   ;;  %vm9_vm1 = vcmask 1048512   ;;  %vm15_vm2 = vcmask 982912   ;;  %vm21_vm3 = vcmask 917312   ;;  %s209_s0 = inlined_call_operand.vmem [shape: f32[16,8], index: 0, kind: input, shape index: {}]   ;;  %s210_s1 = inlined_call_operand.vmem [shape: f32[1,128], index: 1, kind: output, shape index: {}]  }
   0x1   :  { %v103_v0 = vld [vmem:[%s209_s0 + $0xf] sm:$0x1]   ;;  %v105_v1 = vld [vmem:[%s209_s0 + $0xd] sm:$0x1]   ;;  %v104_v2 = vld [vmem:[%s209_s0 + $0xe] sm:$0x1]  }
   0x2   :  { %7 = vrot.lane.b32.xlu0 %v103_v0, %s133_s10  ;;  %19 = vrot.lane.b32.xlu1 %v105_v1, %s134_s11  ;;  %v106_v3 = vld [vmem:[%s209_s0 + $0xc] sm:$0x1]   ;;  %s135_s16 = smov 112   ;;  %s136_s17 = smov 96   ;;  %v107_v4 = vld [vmem:[%s209_s0 + $0xb] sm:$0x1]  }
   0x3   :  { %v108_v5 = vld [vmem:[%s209_s0 + $0xa] sm:$0x1]   ;;  %v2_v6 = vld [vmem:[%s209_s0] sm:$0x1]   ;;  %s137_s24 = smov 88   ;;  %s138_s25 = smov 80  }
   0x4   :  { %4 = vst.msk [vmem:[#allocation0] sm:$0x1] %vm3_vm0, %v2_v6   ;;  %v109_v7 = vld [vmem:[%s209_s0 + $0x9] sm:$0x1]   ;;  %v110_v8 = vld [vmem:[%s209_s0 + $0x8] sm:$0x1]  }
   0x5   :  { %s139_s30 = smov 72   ;;  %s140_s2 = smov 64   ;;  %v111_v9 = vld [vmem:[%s209_s0 + $0x7] sm:$0x1]   ;;  %v112_v10 = vld [vmem:[%s209_s0 + $0x6] sm:$0x1]  }
   0x6   :  { %13 = vrot.lane.b32.xlu0 %v104_v2, %s135_s16  ;;  %25 = vrot.lane.b32.xlu1 %v106_v3, %s136_s17  ;;  %s141_s7 = smov 56   ;;  %s142_s8 = smov 48   ;;  %v113_v11 = vld [vmem:[%s209_s0 + $0x5] sm:$0x1]   ;;  %v114_v12 = vld [vmem:[%s209_s0 + $0x4] sm:$0x1]  }
   0x7   :  { %s143_s13 = smov 40   ;;  %s144_s14 = smov 32   ;;  %v115_v13 = vld [vmem:[%s209_s0 + $0x3] sm:$0x1]   ;;  %v116_v14 = vld [vmem:[%s209_s0 + $0x2] sm:$0x1]  }
   0x8   :  { %s145_s19 = smov 24   ;;  %s146_s20 = smov 16   ;;  %v117_v15 = vld [vmem:[%s209_s0 + $0x1] sm:$0x1]   ;;  %vm27_vm4 = vcmask 851712   ;;  %vm33_vm5 = vcmask 786112  }
   0x9   :  { %s147_s0 = smov 8   ;;  %vm39_vm6 = vcmask 720512   ;;  %vm45_vm7 = vcmask 654912   ;;  %vm51_vm8 = vcmask 589312   ;;  %vm57_vm9 = vcmask 523712  }
   0xa   :  { %31 = vrot.lane.b32.xlu0 %v107_v4, %s137_s24  ;;  %37 = vrot.lane.b32.xlu1 %v108_v5, %s138_s25  ;;  %vm63_vm10 = vcmask 458112   ;;  %vm69_vm11 = vcmask 392512   ;;  %vm75_vm12 = vcmask 326912   ;;  %vm81_vm13 = vcmask 261312  }
   0xb   :  { %vm87_vm14 = vcmask 195712   ;;  %vm93_vm15 = vcmask 130112  }
   0xe   :  { %43 = vrot.lane.b32.xlu0 %v109_v7, %s139_s30  ;;  %49 = vrot.lane.b32.xlu1 %v110_v8, %s140_s2 }
  0x12   :  { %55 = vrot.lane.b32.xlu0 %v111_v9, %s141_s7  ;;  %61 = vrot.lane.b32.xlu1 %v112_v10, %s142_s8 }
  0x16   :  { %67 = vrot.lane.b32.xlu0 %v113_v11, %s143_s13  ;;  %73 = vrot.lane.b32.xlu1 %v114_v12, %s144_s14 }
  0x1a   :  { %79 = vrot.lane.b32.xlu0 %v115_v13, %s145_s19  ;;  %85 = vrot.lane.b32.xlu1 %v116_v14, %s146_s20 }
  0x1e   :  { %91 = vrot.lane.b32.xlu0 %v117_v15, %s147_s0 }
  0x74   :  { %v8_v16 = vpop.permute.xlu0 %7   ;;  %v20_v17 = vpop.permute.xlu1 %19  }
  0x75   :  { %10 = vst.msk [vmem:[#allocation0] sm:$0x1] %vm9_vm1, %v8_v16  }
  0x78   :  { %v14_v18 = vpop.permute.xlu0 %13   ;;  %v26_v19 = vpop.permute.xlu1 %25  }
  0x79   :  { %16 = vst.msk [vmem:[#allocation0] sm:$0x1] %vm15_vm2, %v14_v18  }
  0x7a   :  { %22 = vst.msk [vmem:[#allocation0] sm:$0x1] %vm21_vm3, %v20_v17  }
  0x7b   :  { %28 = vst.msk [vmem:[#allocation0] sm:$0x1] %vm27_vm4, %v26_v19  }
  0x7c   :  { %v32_v20 = vpop.permute.xlu0 %31   ;;  %v38_v21 = vpop.permute.xlu1 %37  }
  0x7d   :  { %34 = vst.msk [vmem:[#allocation0] sm:$0x1] %vm33_vm5, %v32_v20  }
  0x7e   :  { %40 = vst.msk [vmem:[#allocation0] sm:$0x1] %vm39_vm6, %v38_v21  }
  0x80   :  { %v44_v22 = vpop.permute.xlu0 %43   ;;  %v50_v23 = vpop.permute.xlu1 %49  }
  0x81   :  { %46 = vst.msk [vmem:[#allocation0] sm:$0x1] %vm45_vm7, %v44_v22  }
  0x82   :  { %52 = vst.msk [vmem:[#allocation0] sm:$0x1] %vm51_vm8, %v50_v23  }
  0x84   :  { %v56_v24 = vpop.permute.xlu0 %55   ;;  %v62_v25 = vpop.permute.xlu1 %61  }
  0x85   :  { %58 = vst.msk [vmem:[#allocation0] sm:$0x1] %vm57_vm9, %v56_v24  }
  0x86   :  { %64 = vst.msk [vmem:[#allocation0] sm:$0x1] %vm63_vm10, %v62_v25  }
  0x88   :  { %v68_v26 = vpop.permute.xlu0 %67   ;;  %v74_v27 = vpop.permute.xlu1 %73  }
  0x89   :  { %70 = vst.msk [vmem:[#allocation0] sm:$0x1] %vm69_vm11, %v68_v26  }
  0x8a   :  { %76 = vst.msk [vmem:[#allocation0] sm:$0x1] %vm75_vm12, %v74_v27  }
  0x8c   :  { %v80_v28 = vpop.permute.xlu0 %79   ;;  %v86_v29 = vpop.permute.xlu1 %85  }
  0x8d   :  { %82 = vst.msk [vmem:[#allocation0] sm:$0x1] %vm81_vm13, %v80_v28  }
  0x8e   :  { %88 = vst.msk [vmem:[#allocation0] sm:$0x1] %vm87_vm14, %v86_v29  }
  0x90   :  { %v92_v30 = vpop.permute.xlu0 %91  }
  0x91   :  { %94 = vst.msk [vmem:[#allocation0] sm:$0x1] %vm93_vm15, %v92_v30  }
  0x98   :  { %v99_v31 = vld [vmem:[#allocation0] sm:$0x1] }
  0x99   :  { %102 = vst [vmem:[%s210_s1] sm:$0x1] %v99_v31 }

// kernel: conv_block.1
= control target key start
LH: loop header
LB: loop body
LE: loop exit
PB: predicated region body
PF: predicated region fallthrough
CT: control target
= control target key end

     0   :  { %s1263_s18 = smov 0   ;;  %s1451_s0 = inlined_call_operand.vmem [shape: bf16[2,18,64], index: 0, kind: input, shape index: {}]   ;;  %s1452_s1 = inlined_call_operand.vmem [shape: bf16[3,64,128], index: 1, kind: input, shape index: {}]   ;;  %s1453_s2 = inlined_call_operand.vmem [shape: f32[1,128], index: 2, kind: input, shape index: {}]   ;;  %s1454_s3 = inlined_call_operand.vmem [shape: bf16[3,128,128], index: 3, kind: input, shape index: {}]   ;;  %s1455_s4 = inlined_call_operand.vmem [shape: f32[1,128], index: 4, kind: input, shape index: {}]   ;;  %s1456_s5 = inlined_call_operand.vmem [shape: f32[2,16,128], index: 5, kind: output, shape index: {}]  }
   0x1 LB: > { %s920_s19 = sadd.s32 4294967295, %s1228_s18   ;;  %p924_p0 = scmp.ge.s32.totalorder %s1228_s18, 1  ;;  %s1228_s18 = sphi %s1263_s18, %s15_s18  }
   0x2   : > { %p187_p1 = scmp.lt.s32.totalorder %s1228_s18, 3 }
   0x4   : > { %p188_p2 = pnand %p924_p0, %p187_p1 }
   0x5   : > { %p215_p3 = scmp.lt.s32.totalorder (!%p188_p2), %s920_s19, 1 }
   0x6   : > { %191 = sbr.rel (%p188_p2) target bundleno = 485 (0x1e5), region = 40 }
   0xb   : > { %v1183_v0 = vld [vmem:[%s1452_s1 + $0x38] sm:$0xff]   ;;  %v1230_v1 = vmov 0.0   ;;  %v1185_v3 = vld [vmem:[%s1452_s1 + $0x30] sm:$0xff]   ;;  %vm1231_vm0 = vmmov 0   ;;  %s1458_s19 = smov (!%p215_p3, %s920_s19), 1  ;;  %v1187_v5 = vld [vmem:[%s1452_s1 + $0x28] sm:$0xff]   ;;  %v502_v58 = vlaneseq }
   0xc   : > { %1075 = vmatprep.subr.bf16.mxu0 %v1230_v1  ;;  %1087 = vmatprep.subr.bf16.mxu1 %v1230_v1  ;;  %v1184_v2 = vld [vmem:[%s1452_s1 + $0x18] sm:$0xff]   ;;  %v1186_v4 = vld [vmem:[%s1452_s1 + $0x10] sm:$0xff]   ;;  %s1171_s30 = smul.u32 12, %s1458_s19  ;;  %v1188_v6 = vld [vmem:[%s1452_s1 + $0x8] sm:$0xff]   ;;  %vm254_vm1 = vsmask.f32 7424 }
   0xd   : > { %1076 = vmatpush3.bf16.msra.mxu0 %v1183_v0  ;;  %1083 = vmatprep.mubr.msk.bf16.mxu0 %vm1231_vm0, %v1230_v1  ;;  %v1189_v9 = vld [vmem:[%s1452_s1 + $0x20] sm:$0xff]   ;;  %v1193_v18 = vld [vmem:[%s1452_s1 + $0x58] sm:$0xff]   ;;  %vm291_vm2 = vcmask 523264   ;;  %v1194_v26 = vld [vmem:[%s1452_s1 + $0x50] sm:$0xff]   ;;  %vm416_vm3 = vcmask 1046528   ;;  %v503_v63 = vshrl.u32 %v502_v58, 7 }
   0xe   : > { %1088 = vmatpush3.bf16.msra.mxu1 %v1184_v2  ;;  %1077 = vmatprep.subr.bf16.mxu0 %v1230_v1  ;;  %s219_s10 = scalar_lea.vmem %s1451_s0, %s1171_s30  ;;  %v1190_v12 = vld [vmem:[%s1452_s1] sm:$0xff]   ;;  %v1198_v21 = vld [vmem:[%s1454_s3 + $0x78] sm:$0xff]   ;;  %v1195_v27 = vld [vmem:[%s1452_s1 + $0x48] sm:$0xff]   ;;  %vm1232_vm6 = vmmov 1   ;;  %s1030_s6 = sshll.u32 %s1458_s19, 4 }
   0xf   : > { %1089 = vmatprep.subr.bf16.mxu1 %v1230_v1  ;;  %1095 = vmatprep.mubr.msk.bf16.mxu1 %vm1231_vm0, %v1230_v1  ;;  %v226_v7 = vld [vmem:[%s219_s10] sm:$0xf]  ;;  %v227_v8 = vld [vmem:[%s219_s10 + $0x4] sm:$0xf]  ;;  %v1199_v30 = vld [vmem:[%s1454_s3 + $0x70] sm:$0xff]   ;;  %vm509_vm4 = vcmp.lt.s32.totalorder %v503_v63, 1  ;;  %s224_s9 = scalar_lea.vmem %s1456_s5, %s1030_s6 }
  0x10   : > { %v936_v10 = vcombine.low %v226_v7, %v227_v8  ;;  %v1192_v11 = vld [vmem:[%s219_s10 + $0x8] ss:$0 sps:$4 sm:$0x11]   ;;  %v403_v19 = vld [vmem:[%s219_s10] sm:$0xe]  ;;  %v1200_v31 = vld [vmem:[%s1454_s3 + $0x38] sm:$0xff]  }
  0x11   : > { %1078 = vmatpush3.bf16.msra.mxu0 %v1185_v3  ;;  %v263_v15 = vshll.u32 %v1192_v11, 16  ;;  %v956_v20 = vcombine.low %v403_v19, %v227_v8  ;;  %v418_v24 = vrot.slane %v1192_v11, 1  ;;  %v1196_v28 = vld [vmem:[%s1452_s1 + $0x40] sm:$0xff]   ;;  %v1201_v32 = vld [vmem:[%s1454_s3 + $0x68] sm:$0xff]   ;;  %v1202_v33 = vld [vmem:[%s1454_s3 + $0x30] sm:$0xff]   ;;  %vm1031_vm5 = vcmp.ne.s32.totalorder %v503_v63, 0 }
  0x12   : > { %1090 = vmatpush3.bf16.msra.mxu1 %v1186_v4  ;;  %1079 = vmatprep.subr.bf16.mxu0 %v1230_v1  ;;  %v256_v13 = vshrl.u32 %v936_v10, 16  ;;  %v258_v14 = vshll.u32 %v936_v10, 16  ;;  %v1203_v34 = vld [vmem:[%s1454_s3 + $0x60] sm:$0xff]   ;;  %v1204_v35 = vld [vmem:[%s1454_s3 + $0x28] sm:$0xff]   ;;  %v1205_v36 = vld [vmem:[%s1454_s3 + $0x58] sm:$0xff]   ;;  %vm522_vm8 = vcmp.lt.s32.totalorder %v503_v63, 7 }
  0x13   : > { %1091 = vmatprep.subr.bf16.mxu1 %v1230_v1  ;;  %v265_v17 = vrot.slane %v263_v15, 1  ;;  %v417_v23 = vrot.slane %v956_v20, 1  ;;  %v1206_v37 = vld [vmem:[%s1454_s3 + $0x20] sm:$0xff]   ;;  %v1207_v38 = vld [vmem:[%s1454_s3 + $0x50] sm:$0xff]   ;;  %v1208_v39 = vld [vmem:[%s1454_s3 + $0x18] sm:$0xff]  }
  0x14   : > { %v260_v16 = vrot.slane %v258_v14, 1  ;;  %v1209_v40 = vld [vmem:[%s1454_s3 + $0x48] sm:$0xff]   ;;  %v1210_v41 = vld [vmem:[%s1454_s3 + $0x10] sm:$0xff]   ;;  %v1211_v42 = vld [vmem:[%s1454_s3 + $0x40] sm:$0xff]  }
  0x15   : > { %1080 = vmatpush3.bf16.msra.mxu0 %v1187_v5  ;;  %v419_v29 = vsel %vm416_vm3, %v417_v23, %v418_v24  ;;  %v1212_v43 = vld [vmem:[%s1454_s3 + $0x8] sm:$0xff]   ;;  %v1213_v44 = vld [vmem:[%s1454_s3] sm:$0xff]   ;;  %v1214_v5 = vld [vmem:[%s1454_s3 + $0xb8] sm:$0xff]  }
  0x16   : > { %1092 = vmatpush3.bf16.msra.mxu1 %v1188_v6  ;;  %1081 = vmatprep.subr.bf16.mxu0 %v1230_v1  ;;  %v261_v22 = vor.u32 %v260_v16, %v256_v13  ;;  %v962_v55 = vld [vmem:[%s1453_s2] ss:$0 sm:$0xff]  ;;  %vm996_vm7 = vmpackc.low %vm1232_vm6, %vm1031_vm5  ;;  %v1216_v13 = vld [vmem:[%s1454_s3 + $0xa8] sm:$0xff]  }
  0x17   : > { %1093 = vmatprep.subr.bf16.mxu1 %v1230_v1  ;;  %v1217_v14 = vld [vmem:[%s1454_s3 + $0xa0] sm:$0xff]   ;;  %v1218_v15 = vld [vmem:[%s1454_s3 + $0x98] sm:$0xff]   ;;  %v1219_v16 = vld [vmem:[%s1454_s3 + $0x90] sm:$0xff]  }
  0x18   : > { %v266_v25 = vsel %vm254_vm1, %v261_v22, %v265_v17  ;;  %v1220_v17 = vld [vmem:[%s1454_s3 + $0x88] sm:$0xff]  }
  0x19   : > { %1082 = vmatpush3.bf16.msra.mxu0 %v1189_v9 }
  0x1a   : > { %1094 = vmatpush3.bf16.msra.mxu1 %v1190_v12  ;;  %1099 = vmatprep.subr.bf16.mxu0 %v1230_v1  ;;  %v1215_v12 = vld [vmem:[%s1454_s3 + $0xb0] sm:$0xff]  }
  0x1b   : > { %1111 = vmatprep.subr.bf16.mxu1 %v1230_v1 }
  0x1c   : > { %1084 = vmatmul.mubr.msk.bf16.vlgmr.msra.gmra.mxu0 %vm291_vm2, %v266_v25 }
  0x1d   : > { %1096 = vmatmul.mubr.msk.bf16.vlgmr.msra.gmra.mxu1 %vm291_vm2, %v936_v10  ;;  %1100 = vmatpush3.bf16.msra.mxu0 %v1193_v18  ;;  %v504_v18 = vadd.s32 8, %v503_v63 }
  0x1e   : > { %1112 = vmatpush3.bf16.msra.mxu1 %v1198_v21  ;;  %1107 = vmatprep.mubr.msk.bf16.mxu0 %vm1231_vm0, %v1230_v1  ;;  %v1221_v21 = vld [vmem:[%s1454_s3 + $0x80] sm:$0xff]  }
  0x1f   : > { %1101 = vmatprep.subr.bf16.mxu0 %v1230_v1  ;;  %1113 = vmatprep.subr.bf16.mxu1 %v1230_v1  ;;  %vm1032_vm9 = vcmp.ne.s32.totalorder %v504_v18, 15 }
  0x20   : > { %1127 = vmatprep.mubr.msk.bf16.mxu1 %vm1231_vm0, %v1230_v1  ;;  %vm1024_vm10 = vmpackc.low %vm1032_vm9, %vm1232_vm6 }
  0x21   : > { %1102 = vmatpush3.bf16.msra.mxu0 %v1194_v26 }
  0x22   : > { %1103 = vmatprep.subr.bf16.mxu0 %v1230_v1  ;;  %1114 = vmatpush3.bf16.msra.mxu1 %v1199_v30 }
  0x23   : > { %1115 = vmatprep.subr.bf16.mxu1 %v1230_v1 }
  0x25   : > { %1104 = vmatpush3.bf16.msra.mxu0 %v1195_v27 }
  0x26   : > { %1105 = vmatprep.subr.bf16.mxu0 %v1230_v1  ;;  %1116 = vmatpush3.bf16.msra.mxu1 %v1201_v32 }
  0x27   : > { %1117 = vmatprep.subr.bf16.mxu1 %v1230_v1 }
  0x29   : > { %1106 = vmatpush3.bf16.msra.mxu0 %v1196_v28 }
  0x2a   : > { %1131 = vmatprep.subr.bf16.mxu0 %v1230_v1  ;;  %1118 = vmatpush3.bf16.msra.mxu1 %v1203_v34 }
  0x2b   : > { %1119 = vmatprep.subr.bf16.mxu1 %v1230_v1 }
  0x2c   : > { %1108 = vmatmul.mubr.msk.bf16.vlgmr.msra.gmra.mxu0 %vm291_vm2, %v419_v29 }
  0x2d   : > { %1147 = vmatprep.mubr.msk.bf16.mxu0 %vm1231_vm0, %v1230_v1  ;;  %1132 = vmatpush3.bf16.msra.mxu0 %v1200_v31 }
  0x2e   : > { %1133 = vmatprep.subr.bf16.mxu0 %v1230_v1  ;;  %1120 = vmatpush3.bf16.msra.mxu1 %v1205_v36 }
  0x2f   : > { %1121 = vmatprep.subr.bf16.mxu1 %v1230_v1 }
  0x31   : > { %1134 = vmatpush3.bf16.msra.mxu0 %v1202_v33 }
  0x32   : > { %1135 = vmatprep.subr.bf16.mxu0 %v1230_v1  ;;  %1122 = vmatpush3.bf16.msra.mxu1 %v1207_v38 }
  0x33   : > { %1123 = vmatprep.subr.bf16.mxu1 %v1230_v1 }
  0x35   : > { %1136 = vmatpush3.bf16.msra.mxu0 %v1204_v35 }
  0x36   : > { %1137 = vmatprep.subr.bf16.mxu0 %v1230_v1  ;;  %1124 = vmatpush3.bf16.msra.mxu1 %v1209_v40 }
  0x37   : > { %1125 = vmatprep.subr.bf16.mxu1 %v1230_v1 }
  0x39   : > { %1138 = vmatpush3.bf16.msra.mxu0 %v1206_v37 }
  0x3a   : > { %1139 = vmatprep.subr.bf16.mxu0 %v1230_v1  ;;  %1126 = vmatpush3.bf16.msra.mxu1 %v1211_v42 }
  0x3b   : > { %1151 = vmatprep.subr.bf16.mxu1 %v1230_v1 }
  0x3d   : > { %1140 = vmatpush3.bf16.msra.mxu0 %v1208_v39 }
  0x3e   : > { %1141 = vmatprep.subr.bf16.mxu0 %v1230_v1 }
  0x41   : > { %1142 = vmatpush3.bf16.msra.mxu0 %v1210_v41 }
  0x42   : > { %1143 = vmatprep.subr.bf16.mxu0 %v1230_v1 }
  0x45   : > { %1144 = vmatpush3.bf16.msra.mxu0 %v1212_v43 }
  0x46   : > { %1145 = vmatprep.subr.bf16.mxu0 %v1230_v1 }
  0x49   : > { %1146 = vmatpush3.bf16.msra.mxu0 %v1213_v44 }
  0xdc   : > { %v329_v46 = vpop.f32.mrf.mxu0 }
  0xdd   : > { %v396_v45 = vpop.f32.mrf.mxu1 }
  0xde   : > { %v1085_v48 = vpop.f32.mrf.mxu0  ;;  %v397_v53 = vadd.f32 %v396_v45, %v329_v46 }
  0xdf   : > { %v1097_v47 = vpop.f32.mrf.mxu1 }
  0xe0   : > { %v332_v50 = vpop.f32.mrf.mxu0 }
  0xe1   : > { %v399_v49 = vpop.f32.mrf.mxu1 }
  0xe2   : > { %v1086_v52 = vpop.f32.mrf.mxu0  ;;  %v400_v59 = vadd.f32 %v399_v49, %v332_v50 }
  0xe3   : > { %v1098_v51 = vpop.f32.mrf.mxu1 }
  0xec   : > { %v481_v54 = vpop.f32.mrf.mxu0 }
  0xed   : > { %v488_v56 = vadd.f32 %v481_v54, %v397_v53 }
  0xee   : > { %v1109_v57 = vpop.f32.mrf.mxu0 }
  0xef   : > { %v497_v60 = vadd.f32 %v962_v55, %v488_v56 }
  0xf0   : > { %v484_v61 = vpop.f32.mrf.mxu0 }
  0xf1   : > { %v489_v62 = vadd.f32 %v484_v61, %v400_v59  ;;  %v499_v2 = vmax.f32 %v497_v60, 0.0 }
  0xf2   : > { %v1110_v0 = vpop.f32.mrf.mxu0 }
  0xf3   : > { %v498_v3 = vadd.f32 %v962_v55, %v489_v62  ;;  %v507_v6 = vrot.slane %v499_v2, 7  ;;  %v520_v20 = vrot.slane %v499_v2, 1 }
  0xf5   : > { %v500_v4 = vmax.f32 %v498_v3, 0.0 }
  0xf7   : > { %v508_v7 = vrot.slane %v500_v4, 7  ;;  %v501_v8 = vpack.c.bf16 %v500_v4, %v499_v2  ;;  %v521_v19 = vrot.slane %v500_v4, 1 }
  0xf9   : > { %v510_v9 = vsel %vm509_vm4, %v507_v6, %v508_v7  ;;  %v511_v10 = vsel %vm509_vm4, %v508_v7, %v507_v6  ;;  %1128 = vmatmul.mubr.bf16.vlgmr.msra.gmra.mxu1 %v501_v8  ;;  %v523_v22 = vsel %vm522_vm8, %v520_v20, %v521_v19  ;;  %v524_v23 = vsel %vm522_vm8, %v521_v19, %v520_v20 }
  0xfa   : > { %1152 = vmatpush3.bf16.msra.mxu1 %v1214_v5  ;;  %v997_v11 = vpack.c.bf16 %v510_v9, %v511_v10  ;;  %1167 = vmatprep.mubr.msk.bf16.mxu1 %vm1231_vm0, %v1230_v1  ;;  %v1025_v24 = vpack.c.bf16 %v524_v23, %v523_v22 }
  0xfb   : > { %1153 = vmatprep.subr.bf16.mxu1 %v1230_v1 }
  0xfc   : > { %1148 = vmatmul.mubr.msk.bf16.vlgmr.msra.gmra.mxu0 %vm996_vm7, %v997_v11 }
  0xfe   : > { %1154 = vmatpush3.bf16.msra.mxu1 %v1215_v12 }
  0xff   : > { %1155 = vmatprep.subr.bf16.mxu1 %v1230_v1 }
 0x102   : > { %1156 = vmatpush3.bf16.msra.mxu1 %v1216_v13 }
 0x103   : > { %1157 = vmatprep.subr.bf16.mxu1 %v1230_v1 }
 0x106   : > { %1158 = vmatpush3.bf16.msra.mxu1 %v1217_v14 }
 0x107   : > { %1159 = vmatprep.subr.bf16.mxu1 %v1230_v1 }
 0x10a   : > { %1160 = vmatpush3.bf16.msra.mxu1 %v1218_v15 }
 0x10b   : > { %1161 = vmatprep.subr.bf16.mxu1 %v1230_v1 }
 0x10e   : > { %1162 = vmatpush3.bf16.msra.mxu1 %v1219_v16 }
 0x10f   : > { %1163 = vmatprep.subr.bf16.mxu1 %v1230_v1 }
 0x112   : > { %1164 = vmatpush3.bf16.msra.mxu1 %v1220_v17 }
 0x113   : > { %1165 = vmatprep.subr.bf16.mxu1 %v1230_v1  ;;  %v1027_v1 = vld [vmem:[%s1455_s4] ss:$0 sm:$0xff] }
 0x116   : > { %1166 = vmatpush3.bf16.msra.mxu1 %v1221_v21 }
 0x119   : > { %1168 = vmatmul.mubr.msk.bf16.vlgmr.msra.gmra.mxu1 %vm1024_vm10, %v1025_v24 }
 0x1b9   : > { %v647_v25 = vpop.f32.mrf.mxu1 }
 0x1bb   : > { %v1129_v26 = vpop.f32.mrf.mxu1 }
 0x1bc   : > { %v736_v27 = vpop.f32.mrf.mxu0 }
 0x1bd   : > { %v650_v28 = vpop.f32.mrf.mxu1  ;;  %v737_v33 = vadd.f32 %v736_v27, %v647_v25 }
 0x1be   : > { %v1149_v29 = vpop.f32.mrf.mxu0 }
 0x1bf   : > { %v1130_v30 = vpop.f32.mrf.mxu1 }
 0x1c0   : > { %v739_v31 = vpop.f32.mrf.mxu0 }
 0x1c1   : > { %v740_v37 = vadd.f32 %v739_v31, %v650_v28 }
 0x1c2   : > { %v1150_v32 = vpop.f32.mrf.mxu0 }
 0x1d9   : > { %v843_v34 = vpop.f32.mrf.mxu1 }
 0x1da   : > { %v850_v35 = vadd.f32 %v843_v34, %v737_v33 }
 0x1db   : > { %v1169_v36 = vpop.f32.mrf.mxu1 }
 0x1dc   : > { %v859_v38 = vadd.f32 %v1027_v1, %v850_v35 }
 0x1dd   : > { %v846_v39 = vpop.f32.mrf.mxu1 }
 0x1de   : > { %v861_v40 = vmax.f32 %v859_v38, 0.0  ;;  %v851_v41 = vadd.f32 %v846_v39, %v740_v37 }
 0x1df   : > { %v1170_v42 = vpop.f32.mrf.mxu1 }
 0x1e0   : > { %863 = vst [vmem:[%s224_s9] sm:$0xff] %v861_v40  ;;  %v860_v43 = vadd.f32 %v1027_v1, %v851_v41 }
 0x1e2   : > { %v862_v44 = vmax.f32 %v860_v43, 0.0 }
 0x1e4   : > { %864 = vst [vmem:[%s224_s9 + $0x8] sm:$0xff] %v862_v44 }
 0x1e5 PF: > { %s15_s18 = sadd.s32 1, %s1228_s18  }
 0x1e6   : > { %p12_p4 = scmp.ge.s32.totalorder %s15_s18, 4  }
 0x1e8   :  { %14 = sbr.rel (!%p12_p4) target bundleno = 1 (0x1), region = 74 }

</bundles_post_ra>
